<compile_context>
chip_gen: v7x
topology: tpu7x:2x2x1
jax: 0.10.0
libtpu: 0.0.40
codegen_flags: <defaults>
</compile_context>

<pallas_src>
import jax
import jax.numpy as jnp
from jax.experimental import pallas as pl
from jax.experimental.pallas import tpu as pltpu

LANE = 128        # vreg lane width
SUBL_BF16 = 16    # native sublane tile for bf16


def _round_up(n: int, m: int) -> int:
    return ((n + m - 1) // m) * m


def _pad2(a, rows, cols):
    return jnp.pad(a, ((0, rows - a.shape[0]), (0, cols - a.shape[1])))


def fgn_kernel(x_ref, w1_ref, b1_ref, w2_ref, b2_ref, w3_ref, b3_ref, o_ref):
    # x block arrives as f32 (TB, 128); cast to bf16 in-kernel (no extra HBM pass).
    # w1/w2: (128, 128) bf16 zero-padded; w3: (128, 2) bf16.  Biases f32.
    x = x_ref[...].astype(jnp.bfloat16)                                   # (TB, 128)
    h1 = jnp.dot(x, w1_ref[...], preferred_element_type=jnp.float32) + b1_ref[...]
    h1 = jnp.maximum(h1, 0.0).astype(jnp.bfloat16)                        # (TB, 128)
    h2 = jnp.dot(h1, w2_ref[...], preferred_element_type=jnp.float32) + b2_ref[...]
    h2 = jnp.maximum(h2, 0.0).astype(jnp.bfloat16)                        # (TB, 128)
    o = jnp.dot(h2, w3_ref[...], preferred_element_type=jnp.float32) + b3_ref[...]
    o_ref[...] = o.astype(o_ref.dtype)                                    # (TB, 2)


def prepare_params(params):
    """One-time pad+cast of weights/biases (hoisted out of the per-call path)."""
    w1, b1, w2, b2, w3, b3 = params
    w1p = _pad2(w1, 128, LANE).astype(jnp.bfloat16)          # (128, 128)
    w2p = _pad2(w2, LANE, LANE).astype(jnp.bfloat16)         # (128, 128)
    w3p = _pad2(w3, LANE, w3.shape[1]).astype(jnp.bfloat16)  # (128, 2)
    b1p = _pad2(b1, 1, LANE).astype(jnp.float32)             # (1, 128)
    b2p = _pad2(b2, 1, LANE).astype(jnp.float32)             # (1, 128)
    b3p = b3.astype(jnp.float32)                             # (1, 2)
    return (w1p, b1p, w2p, b2p, w3p, b3p)


def _choose_tb(B: int, tb: int) -> int:
    tb = max(SUBL_BF16, _round_up(tb, SUBL_BF16))
    # Keep >=2 grid steps when the batch is large enough (megacore on v7x), but never
    # request a tile bigger than one 16-rounded batch for tiny B.
    tb = min(tb, _round_up(pl.cdiv(B, 2), 512), _round_up(B, SUBL_BF16))
    return max(SUBL_BF16, tb)


def fgn_forward(x, prepared_params, *, tb=2048):
    """x: (B, 128) f32.  prepared_params from prepare_params().  Returns (B, 2) f32."""
    w1p, b1p, w2p, b2p, w3p, b3p = prepared_params
    B, K = x.shape
    assert K == 128

    TB = _choose_tb(B, tb)
    grid = (pl.cdiv(B, TB),)  # partial boundary block OK: OOB rows masked on writeback

    const = lambda shape: pl.BlockSpec(shape, lambda i: (0, 0))  # VMEM-resident weights

    return pl.pallas_call(
        fgn_kernel,
        out_shape=jax.ShapeDtypeStruct((B, 2), jnp.float32),
        grid=grid,
        in_specs=[
            pl.BlockSpec((TB, K), lambda i: (i, 0)),       # x streamed per batch tile
            const(w1p.shape), const(b1p.shape),
            const(w2p.shape), const(b2p.shape),
            const(w3p.shape), const(b3p.shape),
        ],
        out_specs=pl.BlockSpec((TB, 2), lambda i: (i, 0)),
        compiler_params=pltpu.CompilerParams(
            dimension_semantics=("parallel",),             # megacore sharding on v7x
            vmem_limit_bytes=48 * 1024 * 1024,             # <= v7x 64 MiB/TC physical
        ),
    )(x, w1p, b1p, w2p, b2p, w3p, b3p)


def init_params(key):
    # Deterministic init mimicking nn.Linear: U(-1/sqrt(fan_in), 1/sqrt(fan_in)).
    dims = [(128, 120), (120, 84), (84, 2)]
    params = []
    for i, (fan_in, fan_out) in enumerate(dims):
        kw, kb = jax.random.split(jax.random.fold_in(key, i))
        bound = 1.0 / (fan_in ** 0.5)
        w = jax.random.uniform(kw, (fan_in, fan_out), jnp.float32, -bound, bound)
        b = jax.random.uniform(kb, (1, fan_out), jnp.float32, -bound, bound)
        params += [w, b]
    return tuple(params)


def fgn_reference(x, params):
    w1, b1, w2, b2, w3, b3 = params
    h1 = jnp.maximum(x @ w1 + b1, 0.0)
    h2 = jnp.maximum(h1 @ w2 + b2, 0.0)
    return h2 @ w3 + b3


if __name__ == "__main__":
    key = jax.random.PRNGKey(0)
    params = init_params(key)
    prepped = prepare_params(params)   # one-time weight pad/cast

    # B=4: tiny batch, single partial tile.  B=20: not a multiple of 16 (masked rows).
    # B=2500: multi-step grid with a partial boundary block (TB=1536 -> 2 steps).
    for B in (4, 20, 2500):
        x = jax.random.normal(jax.random.fold_in(key, 100 + B), (B, 128), jnp.float32)
        out = fgn_forward(x, prepped, tb=2048)
        jax.block_until_ready(out)

        ref = fgn_reference(x, params)
        assert out.shape == (B, 2)
        # bf16 matmul path -> loosened tolerance vs the f32 reference.
        assert jnp.allclose(out, ref, atol=5e-2, rtol=5e-2), f"mismatch vs reference at B={B}"
    print("KERNEL_OK")
</pallas_src>

<mosaic_0001>
module attributes {stable_mosaic.version = 11 : i64} {
  func.func @fgn_kernel(%arg0: i32, %arg1: memref<16x128xf32, #tpu.memory_space<vmem>>, %arg2: memref<128x128xbf16, #tpu.memory_space<vmem>>, %arg3: memref<1x128xf32, #tpu.memory_space<vmem>>, %arg4: memref<128x128xbf16, #tpu.memory_space<vmem>>, %arg5: memref<1x128xf32, #tpu.memory_space<vmem>>, %arg6: memref<128x2xbf16, #tpu.memory_space<vmem>>, %arg7: memref<1x2xf32, #tpu.memory_space<vmem>>, %arg8: memref<16x2xf32, #tpu.memory_space<vmem>>) attributes {dimension_semantics = [#tpu.dimension_semantics<parallel>], iteration_bounds = array<i64: 1>, scalar_prefetch = 0 : i64, scratch_operands = 0 : i64, tpu.core_type = #tpu.core_type<tc>, window_params = [{transform_indices = @transform_0, window_bounds = array<i64: 16, 128>}, {pipeline_mode = #tpu.pipeline_mode<synchronous>, transform_indices = @transform_1, window_bounds = array<i64: 128, 128>}, {pipeline_mode = #tpu.pipeline_mode<synchronous>, transform_indices = @transform_2, window_bounds = array<i64: 1, 128>}, {pipeline_mode = #tpu.pipeline_mode<synchronous>, transform_indices = @transform_3, window_bounds = array<i64: 128, 128>}, {pipeline_mode = #tpu.pipeline_mode<synchronous>, transform_indices = @transform_4, window_bounds = array<i64: 1, 128>}, {pipeline_mode = #tpu.pipeline_mode<synchronous>, transform_indices = @transform_5, window_bounds = array<i64: 128, 2>}, {pipeline_mode = #tpu.pipeline_mode<synchronous>, transform_indices = @transform_6, window_bounds = array<i64: 1, 2>}, {transform_indices = @transform_7, window_bounds = array<i64: 16, 2>}]} {
    %c0 = arith.constant 0 : index
    %c0_0 = arith.constant 0 : index
    %0 = vector.load %arg1[%c0, %c0_0] : memref<16x128xf32, #tpu.memory_space<vmem>>, vector<16x128xf32>
    %1 = arith.truncf %0 : vector<16x128xf32> to vector<16x128xbf16>
    %c0_1 = arith.constant 0 : index
    %c0_2 = arith.constant 0 : index
    %2 = vector.load %arg2[%c0_1, %c0_2] : memref<128x128xbf16, #tpu.memory_space<vmem>>, vector<128x128xbf16>
    %cst = arith.constant dense<0.000000e+00> : vector<16x128xf32>
    %3 = tpu.matmul %1, %2, %cst {dimension_numbers = #tpu.dot_dimension_numbers<[1], [0], [0], [1], [0, 0, 1, 1], [], []>} : vector<16x128xbf16>, vector<128x128xbf16>, vector<16x128xf32> -> vector<16x128xf32>
    %c0_3 = arith.constant 0 : index
    %c0_4 = arith.constant 0 : index
    %4 = vector.load %arg3[%c0_3, %c0_4] : memref<1x128xf32, #tpu.memory_space<vmem>>, vector<1x128xf32>
    %5 = vector.broadcast %4 : vector<1x128xf32> to vector<16x128xf32>
    %6 = arith.addf %3, %5 : vector<16x128xf32>
    %cst_5 = arith.constant 0.000000e+00 : f32
    %7 = vector.broadcast %cst_5 : f32 to vector<16x128xf32>
    %8 = arith.maximumf %6, %7 : vector<16x128xf32>
    %9 = arith.truncf %8 : vector<16x128xf32> to vector<16x128xbf16>
    %c0_6 = arith.constant 0 : index
    %c0_7 = arith.constant 0 : index
    %10 = vector.load %arg4[%c0_6, %c0_7] : memref<128x128xbf16, #tpu.memory_space<vmem>>, vector<128x128xbf16>
    %cst_8 = arith.constant dense<0.000000e+00> : vector<16x128xf32>
    %11 = tpu.matmul %9, %10, %cst_8 {dimension_numbers = #tpu.dot_dimension_numbers<[1], [0], [0], [1], [0, 0, 1, 1], [], []>} : vector<16x128xbf16>, vector<128x128xbf16>, vector<16x128xf32> -> vector<16x128xf32>
    %c0_9 = arith.constant 0 : index
    %c0_10 = arith.constant 0 : index
    %12 = vector.load %arg5[%c0_9, %c0_10] : memref<1x128xf32, #tpu.memory_space<vmem>>, vector<1x128xf32>
    %13 = vector.broadcast %12 : vector<1x128xf32> to vector<16x128xf32>
    %14 = arith.addf %11, %13 : vector<16x128xf32>
    %cst_11 = arith.constant 0.000000e+00 : f32
    %15 = vector.broadcast %cst_11 : f32 to vector<16x128xf32>
    %16 = arith.maximumf %14, %15 : vector<16x128xf32>
    %17 = arith.truncf %16 : vector<16x128xf32> to vector<16x128xbf16>
    %c0_12 = arith.constant 0 : index
    %c0_13 = arith.constant 0 : index
    %18 = vector.load %arg6[%c0_12, %c0_13] : memref<128x2xbf16, #tpu.memory_space<vmem>>, vector<128x2xbf16>
    %cst_14 = arith.constant dense<0.000000e+00> : vector<16x2xf32>
    %19 = tpu.matmul %17, %18, %cst_14 {dimension_numbers = #tpu.dot_dimension_numbers<[1], [0], [0], [1], [0, 0, 1, 1], [], []>} : vector<16x128xbf16>, vector<128x2xbf16>, vector<16x2xf32> -> vector<16x2xf32>
    %c0_15 = arith.constant 0 : index
    %c0_16 = arith.constant 0 : index
    %20 = vector.load %arg7[%c0_15, %c0_16] : memref<1x2xf32, #tpu.memory_space<vmem>>, vector<1x2xf32>
    %21 = vector.broadcast %20 : vector<1x2xf32> to vector<16x2xf32>
    %22 = arith.addf %19, %21 : vector<16x2xf32>
    %c0_17 = arith.constant 0 : index
    %c0_18 = arith.constant 0 : index
    %23 = vector.load %arg8[%c0_17, %c0_18] : memref<16x2xf32, #tpu.memory_space<vmem>>, vector<16x2xf32>
    tpu.vector_store %arg8[%c0_17, %c0_18], %22 {strides = array<i32>} : memref<16x2xf32, #tpu.memory_space<vmem>>, vector<16x2xf32>,
    return
  }
  func.func @transform_0(%arg0: i32) -> (i32, i32) {
    %c0_i32 = arith.constant 0 : i32
    %c0_i32_0 = arith.constant 0 : i32
    return %arg0, %c0_i32 : i32, i32
  }
  func.func @transform_1(%arg0: i32) -> (i32, i32) {
    %c0_i32 = arith.constant 0 : i32
    %c0_i32_0 = arith.constant 0 : i32
    %c0_i32_1 = arith.constant 0 : i32
    return %c0_i32, %c0_i32_0 : i32, i32
  }
  func.func @transform_2(%arg0: i32) -> (i32, i32) {
    %c0_i32 = arith.constant 0 : i32
    %c0_i32_0 = arith.constant 0 : i32
    %c0_i32_1 = arith.constant 0 : i32
    return %c0_i32, %c0_i32_0 : i32, i32
  }
  func.func @transform_3(%arg0: i32) -> (i32, i32) {
    %c0_i32 = arith.constant 0 : i32
    %c0_i32_0 = arith.constant 0 : i32
    %c0_i32_1 = arith.constant 0 : i32
    return %c0_i32, %c0_i32_0 : i32, i32
  }
  func.func @transform_4(%arg0: i32) -> (i32, i32) {
    %c0_i32 = arith.constant 0 : i32
    %c0_i32_0 = arith.constant 0 : i32
    %c0_i32_1 = arith.constant 0 : i32
    return %c0_i32, %c0_i32_0 : i32, i32
  }
  func.func @transform_5(%arg0: i32) -> (i32, i32) {
    %c0_i32 = arith.constant 0 : i32
    %c0_i32_0 = arith.constant 0 : i32
    %c0_i32_1 = arith.constant 0 : i32
    return %c0_i32, %c0_i32_0 : i32, i32
  }
  func.func @transform_6(%arg0: i32) -> (i32, i32) {
    %c0_i32 = arith.constant 0 : i32
    %c0_i32_0 = arith.constant 0 : i32
    %c0_i32_1 = arith.constant 0 : i32
    return %c0_i32, %c0_i32_0 : i32, i32
  }
  func.func @transform_7(%arg0: i32) -> (i32, i32) {
    %c0_i32 = arith.constant 0 : i32
    %c0_i32_0 = arith.constant 0 : i32
    return %arg0, %c0_i32 : i32, i32
  }
}

</mosaic_0001>

<bundles_post_ra>
// kernel: tpu_custom_call.1
= control target key start
LH: loop header
LB: loop body
LE: loop exit
PB: predicated region body
PF: predicated region fallthrough
CT: control target
= control target key end

     0   :  { %12 = vsyncpa [#allocation3], 0  ;;  %s596_s24 = smov [#allocation2]   ;;  %s749_s0 = inlined_call_operand.vmem [shape: f32[4,128], index: 0, kind: input, shape index: {}]   ;;  %s750_s1 = inlined_call_operand.vmem [shape: bf16[128,128], index: 1, kind: input, shape index: {}]   ;;  %s751_s2 = inlined_call_operand.vmem [shape: f32[1,128], index: 2, kind: input, shape index: {}]   ;;  %s752_s3 = inlined_call_operand.hbm [shape: bf16[128,128], index: 3, kind: input, shape index: {}]   ;;  %s753_s4 = inlined_call_operand.vmem [shape: f32[1,128], index: 4, kind: input, shape index: {}]   ;;  %s754_s5 = inlined_call_operand.vmem [shape: bf16[128,2], index: 5, kind: input, shape index: {}]   ;;  %s755_s6 = inlined_call_operand.vmem [shape: f32[1,2], index: 6, kind: input, shape index: {}]   ;;  %s756_s7 = inlined_call_operand.vmem [shape: f32[4,2], index: 7, kind: output, shape index: {}]  }
   0x1   :  { %s24_s25 = sshll.u32 %s596_s24, 4  ;;  %s572_s28 = scalar_lea.hbm %s752_s3, 1024  ;;  %s25_s25 = int_to_ptr.vmem [resolvable:$true] %s24_s25 }
   0x2   :  { %p573_p0 = scmp.ne.s32.totalorder %s752_s3, %s572_s28  ;;  %p576_p1 = scmp.lt.u32.totalorder %s572_s28, %s752_s3 }
   0x4   :  { %p578_p2 = pnand %p576_p1, %p573_p0 }
   0x6   :  { %581 = shalt.err (!%p578_p2)
}
   0x7   :  { %s582_s10 = scalar_lea.vmem %s25_s25, 1024  ;;  %p587_p4 = scmp.lt.s32.totalorder %s25_s25, %s25_s25 }
   0x8   :  { %p583_p3 = scmp.ne.s32.totalorder %s25_s25, %s582_s10  ;;  %p588_p5 = scmp.lt.s32.totalorder %s582_s10, %s582_s10 }
   0xa   :  { %p589_p6 = por %p588_p5, %p587_p4 }
   0xc   :  { %p590_p7 = pnand %p589_p6, %p583_p3 }
   0xe   :  { %593 = shalt.err (!%p590_p7)
}
   0xf   :  { %s597_s11 = smov 64   ;;  %s598_s12 = smov 4  }
  0x10   :  { %30 = dma.hbm_to_vmem [thread:$0]  %s752_s3, 1024, %s25_s25, [#allocation3], %s597_s11, %s597_s11, %s598_s12  }
  0x11   :  { %594 = dma.done.wait [#allocation3], 1024  }
  0x12   :  { %595 = vsyncadd [#allocation3], 4294966272  ;;  %v599_v0 = vmov 0.0   ;;  %vm600_vm0 = vmmov 0   ;;  %v548_v1 = vld [vmem:[%s750_s1] sm:$0xff]   ;;  %v549_v2 = vld [vmem:[%s750_s1 + $0x8] sm:$0xff]  }
  0x13   :  { %483 = vmatprep.subr.bf16.mxu0 %v599_v0  ;;  %499 = vmatprep.mubr.msk.bf16.mxu0 %vm600_vm0, %v599_v0  ;;  %v550_v3 = vld [vmem:[%s750_s1 + $0x10] sm:$0xff]   ;;  %v556_v4 = vld [vmem:[#allocation2] sm:$0xff]   ;;  %v551_v5 = vld [vmem:[%s750_s1 + $0x18] sm:$0xff]   ;;  %vm386_vm1 = vcmask 15360  }
  0x14   :  { %503 = vmatprep.subr.bf16.mxu1 %v599_v0  ;;  %519 = vmatprep.mubr.msk.bf16.mxu1 %vm600_vm0, %v599_v0  ;;  %v557_v6 = vld [vmem:[#allocation2 + $0x8] sm:$0xff]   ;;  %v552_v7 = vld [vmem:[%s750_s1 + $0x20] sm:$0xff]   ;;  %v558_v8 = vld [vmem:[#allocation2 + $0x10] sm:$0xff]  }
  0x15   :  { %484 = vmatpush3.bf16.msra.mxu0 %v548_v1  ;;  %504 = vmatpush3.bf16.msra.mxu1 %v556_v4  ;;  %v553_v9 = vld [vmem:[%s750_s1 + $0x28] sm:$0xff]   ;;  %v559_v10 = vld [vmem:[#allocation2 + $0x18] sm:$0xff]   ;;  %v554_v11 = vld [vmem:[%s750_s1 + $0x30] sm:$0xff]  }
  0x16   :  { %485 = vmatprep.subr.bf16.mxu0 %v599_v0  ;;  %505 = vmatprep.subr.bf16.mxu1 %v599_v0  ;;  %v560_v12 = vld [vmem:[#allocation2 + $0x20] sm:$0xff]   ;;  %v555_v13 = vld [vmem:[%s750_s1 + $0x38] sm:$0xff]   ;;  %v42_v15 = vld [vmem:[%s749_s0 + $0x8] sm:$0xff] }
  0x17   :  { %v41_v14 = vld [vmem:[%s749_s0] sm:$0xff]  ;;  %v561_v16 = vld [vmem:[#allocation2 + $0x28] sm:$0xff]   ;;  %v562_v18 = vld [vmem:[#allocation2 + $0x30] sm:$0xff]  }
  0x18   :  { %v43_v17 = vpack.c.bf16 %v42_v15, %v41_v14  ;;  %v563_v19 = vld [vmem:[#allocation2 + $0x38] sm:$0xff]   ;;  %v564_v20 = vld [vmem:[%s754_s5] sm:$0xff]   ;;  %v565_v21 = vld [vmem:[%s754_s5 + $0x8] sm:$0xff]  }
  0x19   :  { %486 = vmatpush3.bf16.msra.mxu0 %v549_v2  ;;  %506 = vmatpush3.bf16.msra.mxu1 %v557_v6  ;;  %v566_v22 = vld [vmem:[%s754_s5 + $0x10] sm:$0xff]   ;;  %v567_v23 = vld [vmem:[%s754_s5 + $0x18] sm:$0xff]   ;;  %v568_v24 = vld [vmem:[%s754_s5 + $0x20] sm:$0xff]  }
  0x1a   :  { %487 = vmatprep.subr.bf16.mxu0 %v599_v0  ;;  %507 = vmatprep.subr.bf16.mxu1 %v599_v0  ;;  %v569_v25 = vld [vmem:[%s754_s5 + $0x28] sm:$0xff]   ;;  %v429_v26 = vld [vmem:[%s751_s2] ss:$0 sm:$0xff]  ;;  %v570_v36 = vld [vmem:[%s754_s5 + $0x30] sm:$0xff]  }
  0x1b   :  { %v571_v37 = vld [vmem:[%s754_s5 + $0x38] sm:$0xff]   ;;  %v438_v38 = vld [vmem:[%s753_s4] ss:$0 sm:$0xff] }
  0x1c   :  { %v447_v48 = vld [vmem:[%s755_s6] ss:$0 sm:$0xff] }
  0x1d   :  { %488 = vmatpush3.bf16.msra.mxu0 %v550_v3  ;;  %508 = vmatpush3.bf16.msra.mxu1 %v558_v8 }
  0x1e   :  { %489 = vmatprep.subr.bf16.mxu0 %v599_v0  ;;  %509 = vmatprep.subr.bf16.mxu1 %v599_v0 }
  0x21   :  { %490 = vmatpush3.bf16.msra.mxu0 %v551_v5  ;;  %510 = vmatpush3.bf16.msra.mxu1 %v559_v10 }
  0x22   :  { %491 = vmatprep.subr.bf16.mxu0 %v599_v0  ;;  %511 = vmatprep.subr.bf16.mxu1 %v599_v0 }
  0x25   :  { %492 = vmatpush3.bf16.msra.mxu0 %v552_v7  ;;  %512 = vmatpush3.bf16.msra.mxu1 %v560_v12 }
  0x26   :  { %493 = vmatprep.subr.bf16.mxu0 %v599_v0  ;;  %513 = vmatprep.subr.bf16.mxu1 %v599_v0 }
  0x29   :  { %494 = vmatpush3.bf16.msra.mxu0 %v553_v9  ;;  %514 = vmatpush3.bf16.msra.mxu1 %v561_v16 }
  0x2a   :  { %495 = vmatprep.subr.bf16.mxu0 %v599_v0  ;;  %515 = vmatprep.subr.bf16.mxu1 %v599_v0 }
  0x2d   :  { %496 = vmatpush3.bf16.msra.mxu0 %v554_v11  ;;  %516 = vmatpush3.bf16.msra.mxu1 %v562_v18 }
  0x2e   :  { %497 = vmatprep.subr.bf16.mxu0 %v599_v0  ;;  %517 = vmatprep.subr.bf16.mxu1 %v599_v0 }
  0x31   :  { %498 = vmatpush3.bf16.msra.mxu0 %v555_v13  ;;  %518 = vmatpush3.bf16.msra.mxu1 %v563_v19 }
  0x32   :  { %523 = vmatprep.subr.bf16.mxu0 %v599_v0 }
  0x34   :  { %500 = vmatmul.mubr.bf16.vlgmr.msra.gmra.mrb[0].mxu0 %v43_v17 }
  0x35   :  { %539 = vmatprep.mubr.msk.bf16.mxu0 %vm600_vm0, %v599_v0  ;;  %524 = vmatpush3.bf16.msra.mxu0 %v564_v20 }
  0x36   :  { %525 = vmatprep.subr.bf16.mxu0 %v599_v0 }
  0x39   :  { %526 = vmatpush3.bf16.msra.mxu0 %v565_v21 }
  0x3a   :  { %527 = vmatprep.subr.bf16.mxu0 %v599_v0 }
  0x3d   :  { %528 = vmatpush3.bf16.msra.mxu0 %v566_v22 }
  0x3e   :  { %529 = vmatprep.subr.bf16.mxu0 %v599_v0 }
  0x41   :  { %530 = vmatpush3.bf16.msra.mxu0 %v567_v23 }
  0x42   :  { %531 = vmatprep.subr.bf16.mxu0 %v599_v0 }
  0x45   :  { %532 = vmatpush3.bf16.msra.mxu0 %v568_v24 }
  0x46   :  { %533 = vmatprep.subr.bf16.mxu0 %v599_v0 }
  0x49   :  { %534 = vmatpush3.bf16.msra.mxu0 %v569_v25 }
  0x4a   :  { %535 = vmatprep.subr.bf16.mxu0 %v599_v0 }
  0x4d   :  { %536 = vmatpush3.bf16.msra.mxu0 %v570_v36 }
  0x4e   :  { %537 = vmatprep.subr.bf16.mxu0 %v599_v0 }
  0x51   :  { %538 = vmatpush3.bf16.msra.mxu0 %v571_v37 }
 0x107   :  { %v149_v27 = vpop.f32.mrb[0].mxu0 }
 0x108   :  { %v150_v28 = vadd.f32 %v429_v26, %v149_v27  ;;  %v501_v29 = vpop.f32.mrb[1].mxu0 }
 0x109   :  { %v152_v30 = vpop.f32.mrb[2].mxu0 }
 0x10a   :  { %v153_v31 = vadd.f32 %v429_v26, %v152_v30  ;;  %v502_v32 = vpop.f32.mrb[3].mxu0  ;;  %v156_v33 = vmax.f32 %v150_v28, 0.0 }
 0x10c   :  { %v157_v34 = vmax.f32 %v153_v31, 0.0 }
 0x10e   :  { %v158_v35 = vpack.c.bf16 %v157_v34, %v156_v33 }
 0x110   :  { %520 = vmatmul.mubr.bf16.vlgmr.msra.gmra.mrb[0].mxu1 %v158_v35 }
 0x1e3   :  { %v264_v39 = vpop.f32.mrb[0].mxu1 }
 0x1e4   :  { %v265_v40 = vadd.f32 %v438_v38, %v264_v39  ;;  %v521_v41 = vpop.f32.mrb[1].mxu1 }
 0x1e5   :  { %v267_v42 = vpop.f32.mrb[2].mxu1 }
 0x1e6   :  { %v268_v43 = vadd.f32 %v438_v38, %v267_v42  ;;  %v522_v44 = vpop.f32.mrb[3].mxu1  ;;  %v271_v45 = vmax.f32 %v265_v40, 0.0 }
 0x1e8   :  { %v272_v46 = vmax.f32 %v268_v43, 0.0 }
 0x1ea   :  { %v273_v47 = vpack.c.bf16 %v272_v46, %v271_v45 }
 0x1ec   :  { %540 = vmatmul.mubr.bf16.vlgmr.msra.gmra.mrb[4].mxu0 %v273_v47 }
 0x2bf   :  { %v379_v49 = vpop.f32.mrb[4].mxu0 }
 0x2c0   :  { %v380_v50 = vadd.f32 %v447_v48, %v379_v49  ;;  %v541_v51 = vpop.f32.mrb[5].mxu0 }
 0x2c1   :  { %v382_v52 = vpop.f32.mrb[6].mxu0 }
 0x2c2   :  { %387 = vst.msk [vmem:[#allocation4] sm:$0xff] %vm386_vm1, %v380_v50  ;;  %v542_v53 = vpop.f32.mrb[7].mxu0 }
 0x2c9   :  { %v406_v54 = vld [vmem:[#allocation4] sm:$0xf] }
 0x2ca   :  { %407 = vst [vmem:[%s756_s7] sm:$0xf] %v406_v54 }
 0x2cb   :  { %424 = vsyncpa [#allocation3], 1 }

</bundles_post_ra>
